<compile_context>
chip_gen: v7x
topology: tpu7x:2x2x1
jax: 0.10.0
libtpu: 0.0.40
codegen_flags: <defaults>
</compile_context>

<pallas_src>
import jax
import jax.numpy as jnp
from jax import lax
from jax.experimental import pallas as pl
from jax.experimental.pallas import tpu as pltpu

NEG_SLOPE = 0.01   # nn.LeakyReLU default
D = 32             # node feature width (node_net_layers)
H = 16             # energy-net hidden width
L = 4              # lane groups packed side by side: 4 * D = 128 lanes
LANES = L * D      # 128
FPAD = 16          # packed feature lanes (4 groups x 3 feats, padded 12 -> 16)


def _leaky(v):
    return jnp.where(v >= 0, v, NEG_SLOPE * v)


def _make_pflow_kernel(gpl, N, gb):
    """One grid step = gb graphs, packed as gpl*N node rows x 128 lanes."""
    R4 = gpl * N
    f32, bf16 = jnp.float32, jnp.bfloat16

    def kernel(feat_ref, w1_ref, w_ref, b_ref, out_ref):
        # w1_ref: [16, 128]      bf16  block-diag Linear(3,D) per lane group
        # w_ref : [6, 128, 128]  bf16  [0..4]=blkdiag Linear(D,D), [5]=blkdiag wo1
        # b_ref : [8, 128]       f32   row0=b1a tiled, rows1-5=lin biases tiled,
        #                              row6=bo1 rows (+1.0 at lane H per group),
        #                              row7=wo2 rows (+bo2 at lane H per group)
        b = b_ref[...]                                            # [8, 128] f32

        def lin(x, k):  # block-diagonal Linear(D,D) + LeakyReLU, layer k
            y = jnp.dot(x.astype(bf16), w_ref[k],
                        preferred_element_type=f32) + b[1 + k:2 + k]
            return _leaky(y)

        # net1 layer 1: Linear(3, D) for all 4 lane groups in one K=16 matmul.
        xf = feat_ref[...].astype(bf16)                           # [R4, 16]
        x = _leaky(jnp.dot(xf, w1_ref[...],
                           preferred_element_type=f32) + b[0:1])  # [R4, 128]
        x = lin(x, 0)                                             # net1 layer 2

        # net2..net5: per-graph mean (XLU sublane reduce over the N node rows
        # of each lane group) + broadcast add (VPU), then blkdiag Linear+LReLU.
        for k in range(1, 5):
            x3 = x.reshape(gpl, N, LANES)
            gm = jnp.mean(x3, axis=1, keepdims=True)              # [gpl, 1, 128]
            x = (x3 + gm).reshape(R4, LANES)
            x = lin(x, k)

        # Final per-graph mean, then the energy net (also lane-packed).
        g = jnp.mean(x.reshape(gpl, N, LANES), axis=1)            # [gpl, 128]
        h = _leaky(jnp.dot(g.astype(bf16), w_ref[5],
                           preferred_element_type=f32) + b[6:7])  # [gpl, 128]
        # Linear(H,1)+bo2 as a VPU multiply + per-group lane reduce; the
        # constant-1.0 lane in row 6 times bo2 in row 7 injects the bias.
        t = h * b[7:8]                                            # [gpl, 128]

        # Spread the per-graph scalars into one lane-dense output row:
        # graph (p, j) -> lane p*L + j.  Cheap iota/select spread (O(gpl*gb))
        # instead of a sublane->lane reshape.
        rowi = lax.broadcasted_iota(jnp.int32, (gpl, gb), 0)
        lanei = lax.broadcasted_iota(jnp.int32, (gpl, gb), 1)
        tgt = rowi * L
        spread = jnp.zeros((gpl, gb), f32)
        for j in range(L):
            ej = jnp.sum(t[:, j * D:(j + 1) * D], axis=-1,
                         keepdims=True)                           # [gpl, 1]
            spread = spread + jnp.where(lanei == tgt + j, ej, 0.0)
        out_row = jnp.sum(spread, axis=0, keepdims=True)          # [1, gb]
        out_ref[...] = out_row.reshape(1, 1, gb).astype(out_ref.dtype)

    return kernel


def _pack_params(p):
    """Pack the 9 parameter tensors into 3 lane-packed blobs."""
    f32, bf16 = jnp.float32, jnp.bfloat16

    def blkdiag(w):  # [din, dout] -> [L*din, L*dout] block-diagonal
        din, dout = w.shape
        out = jnp.zeros((L * din, L * dout), f32)
        for j in range(L):
            out = out.at[j * din:(j + 1) * din,
                         j * dout:(j + 1) * dout].set(w.astype(f32))
        return out

    # net1 layer 1: group j's features occupy lanes 3j..3j+2 of the feat block.
    w1a = p["w1a"].astype(f32)                                    # [3, D]
    w1p = jnp.zeros((FPAD, LANES), f32)
    for j in range(L):
        w1p = w1p.at[3 * j:3 * j + 3, j * D:(j + 1) * D].set(w1a)

    # Five stacked Linear(D,D) + energy-net Linear(D,H) padded to DxD.
    wo1_pad = jnp.zeros((D, D), f32).at[:, :H].set(p["wo1"].astype(f32))
    wblob = jnp.stack([blkdiag(p["wstk"][k]) for k in range(5)]
                      + [blkdiag(wo1_pad)], axis=0)               # [6, 128, 128]

    # Bias / row blob: exactly one f32 (8,128) tile.
    def tile_b(b):                                                # [1, D] -> [128]
        return jnp.tile(b.astype(f32).reshape(D), (L,))

    bo1_row = jnp.zeros((LANES,), f32)
    wo2_row = jnp.zeros((LANES,), f32)
    for j in range(L):
        bo1_row = bo1_row.at[j * D:j * D + H].set(p["bo1"].astype(f32)[0])
        bo1_row = bo1_row.at[j * D + H].set(1.0)                  # h==1.0 lane
        wo2_row = wo2_row.at[j * D:j * D + H].set(p["wo2"].astype(f32)[:, 0])
        wo2_row = wo2_row.at[j * D + H].set(p["bo2"].astype(f32)[0, 0])  # bo2
    bblob = jnp.stack([tile_b(p["b1a"])]
                      + [tile_b(p["bstk"][k]) for k in range(5)]
                      + [bo1_row, wo2_row], axis=0)               # [8, 128]

    return w1p.astype(bf16), wblob.astype(bf16), bblob


def _pick_graphs_per_block(B, N, target_rows=512, max_rows=2048):
    """Pick graphs/step: >=2 pipelined steps (dual-TC on v7x), ~512-2048 packed
    node rows per step, capped so the feat block + activations stay well inside
    v5e's 16 MiB / v7x's 32 MiB scoped-VMEM defaults."""
    cands = [g for g in range(L, B + 1, L)
             if B % g == 0 and ((g // L) * N) % 8 == 0]
    if not cands:
        raise ValueError(
            "B needs a divisor that is a multiple of 4 (4-way lane packing) "
            "with (gb/4)*N a multiple of 8; pad the batch of graphs or pass "
            "graphs_per_block explicitly.")
    multi = [g for g in cands if B // g >= 2] or cands
    fit = [g for g in multi if (g // L) * N <= max_rows] or [min(multi)]
    reach = [g for g in fit if (g // L) * N >= target_rows]
    return min(reach) if reach else max(fit)


def pflow_forward(feat_bn3, params, graphs_per_block=None):
    """feat_bn3: [B, N, 3] node features (B equal-size graphs). Returns [B]."""
    B, N, F = feat_bn3.shape
    assert F == 3
    gb = (_pick_graphs_per_block(B, N) if graphs_per_block is None
          else graphs_per_block)
    assert B % gb == 0, "graphs_per_block must divide B"
    assert gb % L == 0, "graphs_per_block must be a multiple of 4 (lane packing)"
    gpl = gb // L                     # graphs per lane group per block
    R4 = gpl * N                      # packed node rows per block
    assert R4 % 8 == 0, "(graphs_per_block/4)*N must be a multiple of 8"
    G = B // gb                       # grid steps

    # Lane-pack: within block blk, node row (p, n) holds graph blk*gb + p*L + j
    # in lane group j (3 feature lanes each, zero-padded to 16 lanes total).
    f = feat_bn3.astype(jnp.float32).reshape(G, gpl, L, N, F)
    f = jnp.transpose(f, (0, 1, 3, 2, 4)).reshape(G * R4, L * F)
    f = jnp.pad(f, ((0, 0), (0, FPAD - L * F)))                   # [G*R4, 16]

    w1p, wblob, bblob = _pack_params(params)

    out = pl.pallas_call(
        _make_pflow_kernel(gpl, N, gb),
        out_shape=jax.ShapeDtypeStruct((G, 1, gb), jnp.float32),
        grid=(G,),
        in_specs=[
            pl.BlockSpec((R4, FPAD), lambda i: (i, 0)),           # features
            pl.BlockSpec((FPAD, LANES), lambda i: (0, 0)),        # Linear(3,D)
            pl.BlockSpec((6, LANES, LANES), lambda i: (0, 0, 0)),  # blkdiag weights
            pl.BlockSpec((8, LANES), lambda i: (0, 0)),           # biases / rows
        ],
        out_specs=pl.BlockSpec((1, 1, gb), lambda i: (i, 0, 0)),  # lane-dense row
        compiler_params=pltpu.CompilerParams(
            dimension_semantics=("parallel",),
            vmem_limit_bytes=32 * 1024 * 1024),
    )(f, w1p, wblob, bblob)
    return out.reshape(B)             # energy.squeeze(-1), graphs in order


def init_params(key, node_dim=D, energy_hidden=H):
    ks = jax.random.split(key, 8)

    def rnd(k, shape, scale):
        return (scale * jax.random.normal(k, shape)).astype(jnp.float32)

    return {
        # net1 first layer: Linear(3, D)
        "w1a": rnd(ks[0], (3, node_dim), 0.5),
        "b1a": rnd(ks[1], (1, node_dim), 0.1),
        # stacked Linear(D, D): [net1-layer2, net2, net3, net4, net5]
        "wstk": rnd(ks[2], (5, node_dim, node_dim), 0.2),
        "bstk": rnd(ks[3], (5, 1, node_dim), 0.1),
        # output (energy) net: Linear(D, H) + LReLU + Linear(H, 1)
        "wo1": rnd(ks[4], (node_dim, energy_hidden), 0.2),
        "bo1": rnd(ks[5], (1, energy_hidden), 0.1),
        "wo2": rnd(ks[6], (energy_hidden, 1), 0.2),
        "bo2": rnd(ks[7], (1, 1), 0.1),
    }


def pflow_reference(feat_bn3, p, matmul_dtype=jnp.float32):
    """Pure-JAX reference mirroring the PyTorch forward (optionally with the
    same bf16 matmul-operand rounding the kernel uses)."""
    md = matmul_dtype

    def mm(a, w):
        return jnp.dot(a.astype(md), w.astype(md),
                       preferred_element_type=jnp.float32)

    x = feat_bn3.astype(jnp.float32)                         # [B, N, 3]
    x = _leaky(mm(x, p["w1a"]) + p["b1a"])
    x = _leaky(mm(x, p["wstk"][0]) + p["bstk"][0])
    for k in range(1, 5):
        gm = jnp.mean(x, axis=1, keepdims=True)              # dgl.mean_nodes
        x = _leaky(mm(x + gm, p["wstk"][k]) + p["bstk"][k])  # broadcast+add, net_k
    g = jnp.mean(x, axis=1)                                  # [B, D]
    h = _leaky(mm(g, p["wo1"]) + p["bo1"])
    e = mm(h, p["wo2"]) + p["bo2"]                           # [B, 1]
    return e[:, 0]


# TODO(synk): ragged per-graph node counts (true DGL batching) are not
# supported; the kernel assumes B equal-size graphs in a dense [B, N, 3] layout.

if __name__ == "__main__":
    key = jax.random.PRNGKey(0)
    k_feat, k_param = jax.random.split(key)

    # 16 graphs x 8 nodes: heuristic picks gb=8 -> grid=(2,) parallel steps,
    # 4-way lane packing (2 graphs per lane group, 16 packed rows per step).
    B, N = 16, 8
    feat = jax.random.normal(k_feat, (B, N, 3), dtype=jnp.float32)
    params = init_params(k_param)

    energy = jax.block_until_ready(jax.jit(pflow_forward)(feat, params))
    assert energy.shape == (B,)

    # Tight check vs a reference with the same bf16 matmul-operand rounding,
    # loose check vs the pure-f32 reference (bf16 MXU operands loosen numerics).
    ref_bf16 = pflow_reference(feat, params, matmul_dtype=jnp.bfloat16)
    ref_f32 = pflow_reference(feat, params)
    assert jnp.allclose(energy, ref_bf16, rtol=2e-2, atol=2e-2), (energy, ref_bf16)
    assert jnp.allclose(energy, ref_f32, rtol=1e-1, atol=1e-1), (energy, ref_f32)

    print("KERNEL_OK")
</pallas_src>

<mosaic_0001>
module attributes {stable_mosaic.version = 11 : i64} {
  func.func @kernel(%arg0: i32, %arg1: memref<16x16xf32, #tpu.memory_space<vmem>>, %arg2: memref<16x128xbf16, #tpu.memory_space<vmem>>, %arg3: memref<6x128x128xbf16, #tpu.memory_space<vmem>>, %arg4: memref<8x128xf32, #tpu.memory_space<vmem>>, %arg5: memref<1x1x8xf32, #tpu.memory_space<vmem>>) attributes {dimension_semantics = [#tpu.dimension_semantics<parallel>], iteration_bounds = array<i64: 2>, scalar_prefetch = 0 : i64, scratch_operands = 0 : i64, tpu.core_type = #tpu.core_type<tc>, window_params = [{transform_indices = @transform_0, window_bounds = array<i64: 16, 16>}, {pipeline_mode = #tpu.pipeline_mode<synchronous>, transform_indices = @transform_1, window_bounds = array<i64: 16, 128>}, {pipeline_mode = #tpu.pipeline_mode<synchronous>, transform_indices = @transform_2, window_bounds = array<i64: 6, 128, 128>}, {pipeline_mode = #tpu.pipeline_mode<synchronous>, transform_indices = @transform_3, window_bounds = array<i64: 8, 128>}, {transform_indices = @transform_4, window_bounds = array<i64: 1, 1, 8>}]} {
    %c0 = arith.constant 0 : index
    %c0_0 = arith.constant 0 : index
    %0 = vector.load %arg4[%c0, %c0_0] : memref<8x128xf32, #tpu.memory_space<vmem>>, vector<8x128xf32>
    %c0_1 = arith.constant 0 : index
    %c0_2 = arith.constant 0 : index
    %1 = vector.load %arg1[%c0_1, %c0_2] : memref<16x16xf32, #tpu.memory_space<vmem>>, vector<16x16xf32>
    %2 = arith.truncf %1 : vector<16x16xf32> to vector<16x16xbf16>
    %c0_3 = arith.constant 0 : index
    %c0_4 = arith.constant 0 : index
    %3 = vector.load %arg2[%c0_3, %c0_4] : memref<16x128xbf16, #tpu.memory_space<vmem>>, vector<16x128xbf16>
    %cst = arith.constant dense<0.000000e+00> : vector<16x128xf32>
    %4 = tpu.matmul %2, %3, %cst {dimension_numbers = #tpu.dot_dimension_numbers<[1], [0], [0], [1], [0, 0, 1, 1], [], []>} : vector<16x16xbf16>, vector<16x128xbf16>, vector<16x128xf32> -> vector<16x128xf32>
    %5 = vector.extract_strided_slice %0 {offsets = [0, 0], sizes = [1, 128], strides = [1, 1]} : vector<8x128xf32> to vector<1x128xf32>
    %6 = vector.broadcast %5 : vector<1x128xf32> to vector<16x128xf32>
    %7 = arith.addf %4, %6 : vector<16x128xf32>
    %cst_5 = arith.constant 0.000000e+00 : f32
    %8 = vector.broadcast %cst_5 : f32 to vector<16x128xf32>
    %9 = arith.cmpf oge, %7, %8 : vector<16x128xf32>
    %cst_6 = arith.constant 0.00999999977 : f32
    %10 = vector.broadcast %cst_6 : f32 to vector<16x128xf32>
    %11 = arith.mulf %10, %7 : vector<16x128xf32>
    %12 = arith.select %9, %7, %11 : vector<16x128xi1>, vector<16x128xf32>
    %13 = arith.truncf %12 : vector<16x128xf32> to vector<16x128xbf16>
    %c0_7 = arith.constant 0 : index
    %c0_8 = arith.constant 0 : index
    %c0_9 = arith.constant 0 : index
    %14 = vector.load %arg3[%c0_7, %c0_8, %c0_9] : memref<6x128x128xbf16, #tpu.memory_space<vmem>>, vector<1x128x128xbf16>
    %15 = vector.shape_cast %14 : vector<1x128x128xbf16> to vector<128x128xbf16>
    %cst_10 = arith.constant dense<0.000000e+00> : vector<16x128xf32>
    %16 = tpu.matmul %13, %15, %cst_10 {dimension_numbers = #tpu.dot_dimension_numbers<[1], [0], [0], [1], [0, 0, 1, 1], [], []>} : vector<16x128xbf16>, vector<128x128xbf16>, vector<16x128xf32> -> vector<16x128xf32>
    %17 = vector.extract_strided_slice %0 {offsets = [1, 0], sizes = [1, 128], strides = [1, 1]} : vector<8x128xf32> to vector<1x128xf32>
    %18 = vector.broadcast %17 : vector<1x128xf32> to vector<16x128xf32>
    %19 = arith.addf %16, %18 : vector<16x128xf32>
    %cst_11 = arith.constant 0.000000e+00 : f32
    %20 = vector.broadcast %cst_11 : f32 to vector<16x128xf32>
    %21 = arith.cmpf oge, %19, %20 : vector<16x128xf32>
    %cst_12 = arith.constant 0.00999999977 : f32
    %22 = vector.broadcast %cst_12 : f32 to vector<16x128xf32>
    %23 = arith.mulf %22, %19 : vector<16x128xf32>
    %24 = arith.select %21, %19, %23 : vector<16x128xi1>, vector<16x128xf32>
    %25 = vector.shape_cast %24 : vector<16x128xf32> to vector<2x8x128xf32>
    %cst_13 = arith.constant dense<0.000000e+00> : vector<2x128xf32>
    %26 = vector.multi_reduction <add>, %25, %cst_13 [1] : vector<2x8x128xf32> to vector<2x128xf32>
    %27 = vector.shape_cast %26 : vector<2x128xf32> to vector<2x1x128xf32>
    %cst_14 = arith.constant 8.000000e+00 : f32
    %28 = vector.broadcast %cst_14 : f32 to vector<2x1x128xf32>
    %29 = arith.divf %27, %28 : vector<2x1x128xf32>
    %30 = vector.broadcast %29 : vector<2x1x128xf32> to vector<2x8x128xf32>
    %31 = arith.addf %25, %30 : vector<2x8x128xf32>
    %32 = vector.shape_cast %31 : vector<2x8x128xf32> to vector<16x128xf32>
    %33 = arith.truncf %32 : vector<16x128xf32> to vector<16x128xbf16>
    %c1 = arith.constant 1 : index
    %c0_15 = arith.constant 0 : index
    %c0_16 = arith.constant 0 : index
    %34 = vector.load %arg3[%c1, %c0_15, %c0_16] : memref<6x128x128xbf16, #tpu.memory_space<vmem>>, vector<1x128x128xbf16>
    %35 = vector.shape_cast %34 : vector<1x128x128xbf16> to vector<128x128xbf16>
    %cst_17 = arith.constant dense<0.000000e+00> : vector<16x128xf32>
    %36 = tpu.matmul %33, %35, %cst_17 {dimension_numbers = #tpu.dot_dimension_numbers<[1], [0], [0], [1], [0, 0, 1, 1], [], []>} : vector<16x128xbf16>, vector<128x128xbf16>, vector<16x128xf32> -> vector<16x128xf32>
    %37 = vector.extract_strided_slice %0 {offsets = [2, 0], sizes = [1, 128], strides = [1, 1]} : vector<8x128xf32> to vector<1x128xf32>
    %38 = vector.broadcast %37 : vector<1x128xf32> to vector<16x128xf32>
    %39 = arith.addf %36, %38 : vector<16x128xf32>
    %cst_18 = arith.constant 0.000000e+00 : f32
    %40 = vector.broadcast %cst_18 : f32 to vector<16x128xf32>
    %41 = arith.cmpf oge, %39, %40 : vector<16x128xf32>
    %cst_19 = arith.constant 0.00999999977 : f32
    %42 = vector.broadcast %cst_19 : f32 to vector<16x128xf32>
    %43 = arith.mulf %42, %39 : vector<16x128xf32>
    %44 = arith.select %41, %39, %43 : vector<16x128xi1>, vector<16x128xf32>
    %45 = vector.shape_cast %44 : vector<16x128xf32> to vector<2x8x128xf32>
    %cst_20 = arith.constant dense<0.000000e+00> : vector<2x128xf32>
    %46 = vector.multi_reduction <add>, %45, %cst_20 [1] : vector<2x8x128xf32> to vector<2x128xf32>
    %47 = vector.shape_cast %46 : vector<2x128xf32> to vector<2x1x128xf32>
    %cst_21 = arith.constant 8.000000e+00 : f32
    %48 = vector.broadcast %cst_21 : f32 to vector<2x1x128xf32>
    %49 = arith.divf %47, %48 : vector<2x1x128xf32>
    %50 = vector.broadcast %49 : vector<2x1x128xf32> to vector<2x8x128xf32>
    %51 = arith.addf %45, %50 : vector<2x8x128xf32>
    %52 = vector.shape_cast %51 : vector<2x8x128xf32> to vector<16x128xf32>
    %53 = arith.truncf %52 : vector<16x128xf32> to vector<16x128xbf16>
    %c2 = arith.constant 2 : index
    %c0_22 = arith.constant 0 : index
    %c0_23 = arith.constant 0 : index
    %54 = vector.load %arg3[%c2, %c0_22, %c0_23] : memref<6x128x128xbf16, #tpu.memory_space<vmem>>, vector<1x128x128xbf16>
    %55 = vector.shape_cast %54 : vector<1x128x128xbf16> to vector<128x128xbf16>
    %cst_24 = arith.constant dense<0.000000e+00> : vector<16x128xf32>
    %56 = tpu.matmul %53, %55, %cst_24 {dimension_numbers = #tpu.dot_dimension_numbers<[1], [0], [0], [1], [0, 0, 1, 1], [], []>} : vector<16x128xbf16>, vector<128x128xbf16>, vector<16x128xf32> -> vector<16x128xf32>
    %57 = vector.extract_strided_slice %0 {offsets = [3, 0], sizes = [1, 128], strides = [1, 1]} : vector<8x128xf32> to vector<1x128xf32>
    %58 = vector.broadcast %57 : vector<1x128xf32> to vector<16x128xf32>
    %59 = arith.addf %56, %58 : vector<16x128xf32>
    %cst_25 = arith.constant 0.000000e+00 : f32
    %60 = vector.broadcast %cst_25 : f32 to vector<16x128xf32>
    %61 = arith.cmpf oge, %59, %60 : vector<16x128xf32>
    %cst_26 = arith.constant 0.00999999977 : f32
    %62 = vector.broadcast %cst_26 : f32 to vector<16x128xf32>
    %63 = arith.mulf %62, %59 : vector<16x128xf32>
    %64 = arith.select %61, %59, %63 : vector<16x128xi1>, vector<16x128xf32>
    %65 = vector.shape_cast %64 : vector<16x128xf32> to vector<2x8x128xf32>
    %cst_27 = arith.constant dense<0.000000e+00> : vector<2x128xf32>
    %66 = vector.multi_reduction <add>, %65, %cst_27 [1] : vector<2x8x128xf32> to vector<2x128xf32>
    %67 = vector.shape_cast %66 : vector<2x128xf32> to vector<2x1x128xf32>
    %cst_28 = arith.constant 8.000000e+00 : f32
    %68 = vector.broadcast %cst_28 : f32 to vector<2x1x128xf32>
    %69 = arith.divf %67, %68 : vector<2x1x128xf32>
    %70 = vector.broadcast %69 : vector<2x1x128xf32> to vector<2x8x128xf32>
    %71 = arith.addf %65, %70 : vector<2x8x128xf32>
    %72 = vector.shape_cast %71 : vector<2x8x128xf32> to vector<16x128xf32>
    %73 = arith.truncf %72 : vector<16x128xf32> to vector<16x128xbf16>
    %c3 = arith.constant 3 : index
    %c0_29 = arith.constant 0 : index
    %c0_30 = arith.constant 0 : index
    %74 = vector.load %arg3[%c3, %c0_29, %c0_30] : memref<6x128x128xbf16, #tpu.memory_space<vmem>>, vector<1x128x128xbf16>
    %75 = vector.shape_cast %74 : vector<1x128x128xbf16> to vector<128x128xbf16>
    %cst_31 = arith.constant dense<0.000000e+00> : vector<16x128xf32>
    %76 = tpu.matmul %73, %75, %cst_31 {dimension_numbers = #tpu.dot_dimension_numbers<[1], [0], [0], [1], [0, 0, 1, 1], [], []>} : vector<16x128xbf16>, vector<128x128xbf16>, vector<16x128xf32> -> vector<16x128xf32>
    %77 = vector.extract_strided_slice %0 {offsets = [4, 0], sizes = [1, 128], strides = [1, 1]} : vector<8x128xf32> to vector<1x128xf32>
    %78 = vector.broadcast %77 : vector<1x128xf32> to vector<16x128xf32>
    %79 = arith.addf %76, %78 : vector<16x128xf32>
    %cst_32 = arith.constant 0.000000e+00 : f32
    %80 = vector.broadcast %cst_32 : f32 to vector<16x128xf32>
    %81 = arith.cmpf oge, %79, %80 : vector<16x128xf32>
    %cst_33 = arith.constant 0.00999999977 : f32
    %82 = vector.broadcast %cst_33 : f32 to vector<16x128xf32>
    %83 = arith.mulf %82, %79 : vector<16x128xf32>
    %84 = arith.select %81, %79, %83 : vector<16x128xi1>, vector<16x128xf32>
    %85 = vector.shape_cast %84 : vector<16x128xf32> to vector<2x8x128xf32>
    %cst_34 = arith.constant dense<0.000000e+00> : vector<2x128xf32>
    %86 = vector.multi_reduction <add>, %85, %cst_34 [1] : vector<2x8x128xf32> to vector<2x128xf32>
    %87 = vector.shape_cast %86 : vector<2x128xf32> to vector<2x1x128xf32>
    %cst_35 = arith.constant 8.000000e+00 : f32
    %88 = vector.broadcast %cst_35 : f32 to vector<2x1x128xf32>
    %89 = arith.divf %87, %88 : vector<2x1x128xf32>
    %90 = vector.broadcast %89 : vector<2x1x128xf32> to vector<2x8x128xf32>
    %91 = arith.addf %85, %90 : vector<2x8x128xf32>
    %92 = vector.shape_cast %91 : vector<2x8x128xf32> to vector<16x128xf32>
    %93 = arith.truncf %92 : vector<16x128xf32> to vector<16x128xbf16>
    %c4 = arith.constant 4 : index
    %c0_36 = arith.constant 0 : index
    %c0_37 = arith.constant 0 : index
    %94 = vector.load %arg3[%c4, %c0_36, %c0_37] : memref<6x128x128xbf16, #tpu.memory_space<vmem>>, vector<1x128x128xbf16>
    %95 = vector.shape_cast %94 : vector<1x128x128xbf16> to vector<128x128xbf16>
    %cst_38 = arith.constant dense<0.000000e+00> : vector<16x128xf32>
    %96 = tpu.matmul %93, %95, %cst_38 {dimension_numbers = #tpu.dot_dimension_numbers<[1], [0], [0], [1], [0, 0, 1, 1], [], []>} : vector<16x128xbf16>, vector<128x128xbf16>, vector<16x128xf32> -> vector<16x128xf32>
    %97 = vector.extract_strided_slice %0 {offsets = [5, 0], sizes = [1, 128], strides = [1, 1]} : vector<8x128xf32> to vector<1x128xf32>
    %98 = vector.broadcast %97 : vector<1x128xf32> to vector<16x128xf32>
    %99 = arith.addf %96, %98 : vector<16x128xf32>
    %cst_39 = arith.constant 0.000000e+00 : f32
    %100 = vector.broadcast %cst_39 : f32 to vector<16x128xf32>
    %101 = arith.cmpf oge, %99, %100 : vector<16x128xf32>
    %cst_40 = arith.constant 0.00999999977 : f32
    %102 = vector.broadcast %cst_40 : f32 to vector<16x128xf32>
    %103 = arith.mulf %102, %99 : vector<16x128xf32>
    %104 = arith.select %101, %99, %103 : vector<16x128xi1>, vector<16x128xf32>
    %105 = vector.shape_cast %104 : vector<16x128xf32> to vector<2x8x128xf32>
    %cst_41 = arith.constant dense<0.000000e+00> : vector<2x128xf32>
    %106 = vector.multi_reduction <add>, %105, %cst_41 [1] : vector<2x8x128xf32> to vector<2x128xf32>
    %cst_42 = arith.constant 8.000000e+00 : f32
    %107 = vector.broadcast %cst_42 : f32 to vector<2x128xf32>
    %108 = arith.divf %106, %107 : vector<2x128xf32>
    %109 = arith.truncf %108 : vector<2x128xf32> to vector<2x128xbf16>
    %c5 = arith.constant 5 : index
    %c0_43 = arith.constant 0 : index
    %c0_44 = arith.constant 0 : index
    %110 = vector.load %arg3[%c5, %c0_43, %c0_44] : memref<6x128x128xbf16, #tpu.memory_space<vmem>>, vector<1x128x128xbf16>
    %111 = vector.shape_cast %110 : vector<1x128x128xbf16> to vector<128x128xbf16>
    %cst_45 = arith.constant dense<0.000000e+00> : vector<2x128xf32>
    %112 = tpu.matmul %109, %111, %cst_45 {dimension_numbers = #tpu.dot_dimension_numbers<[1], [0], [0], [1], [0, 0, 1, 1], [], []>} : vector<2x128xbf16>, vector<128x128xbf16>, vector<2x128xf32> -> vector<2x128xf32>
    %113 = vector.extract_strided_slice %0 {offsets = [6, 0], sizes = [1, 128], strides = [1, 1]} : vector<8x128xf32> to vector<1x128xf32>
    %114 = vector.broadcast %113 : vector<1x128xf32> to vector<2x128xf32>
    %115 = arith.addf %112, %114 : vector<2x128xf32>
    %cst_46 = arith.constant 0.000000e+00 : f32
    %116 = vector.broadcast %cst_46 : f32 to vector<2x128xf32>
    %117 = arith.cmpf oge, %115, %116 : vector<2x128xf32>
    %cst_47 = arith.constant 0.00999999977 : f32
    %118 = vector.broadcast %cst_47 : f32 to vector<2x128xf32>
    %119 = arith.mulf %118, %115 : vector<2x128xf32>
    %120 = arith.select %117, %115, %119 : vector<2x128xi1>, vector<2x128xf32>
    %121 = vector.extract_strided_slice %0 {offsets = [7, 0], sizes = [1, 128], strides = [1, 1]} : vector<8x128xf32> to vector<1x128xf32>
    %122 = vector.broadcast %121 : vector<1x128xf32> to vector<2x128xf32>
    %123 = arith.mulf %120, %122 : vector<2x128xf32>
    %124 = tpu.iota {dimensions = array<i32: 0>} : vector<2x8xi32>
    %125 = tpu.iota {dimensions = array<i32: 1>} : vector<2x8xi32>
    %c4_i32 = arith.constant 4 : i32
    %126 = vector.broadcast %c4_i32 : i32 to vector<2x8xi32>
    %127 = arith.muli %124, %126 : vector<2x8xi32>
    %cst_48 = arith.constant 0.000000e+00 : f32
    %128 = vector.broadcast %cst_48 : f32 to vector<2x8xf32>
    %129 = vector.extract_strided_slice %123 {offsets = [0, 0], sizes = [2, 32], strides = [1, 1]} : vector<2x128xf32> to vector<2x32xf32>
    %cst_49 = arith.constant dense<0.000000e+00> : vector<2xf32>
    %130 = vector.multi_reduction <add>, %129, %cst_49 [1] : vector<2x32xf32> to vector<2xf32>
    %131 = vector.shape_cast %130 : vector<2xf32> to vector<2x1xf32>
    %c0_i32 = arith.constant 0 : i32
    %132 = vector.broadcast %c0_i32 : i32 to vector<2x8xi32>
    %133 = arith.addi %127, %132 : vector<2x8xi32>
    %134 = arith.cmpi eq, %125, %133 : vector<2x8xi32>
    %cst_50 = arith.constant 0.000000e+00 : f32
    %135 = vector.shape_cast %131 : vector<2x1xf32> to vector<2x1xf32>
    %136 = vector.broadcast %135 : vector<2x1xf32> to vector<2x8xf32>
    %137 = vector.broadcast %cst_50 : f32 to vector<2x8xf32>
    %138 = arith.select %134, %136, %137 : vector<2x8xi1>, vector<2x8xf32>
    %139 = arith.addf %128, %138 : vector<2x8xf32>
    %140 = vector.extract_strided_slice %123 {offsets = [0, 32], sizes = [2, 32], strides = [1, 1]} : vector<2x128xf32> to vector<2x32xf32>
    %cst_51 = arith.constant dense<0.000000e+00> : vector<2xf32>
    %141 = vector.multi_reduction <add>, %140, %cst_51 [1] : vector<2x32xf32> to vector<2xf32>
    %142 = vector.shape_cast %141 : vector<2xf32> to vector<2x1xf32>
    %c1_i32 = arith.constant 1 : i32
    %143 = vector.broadcast %c1_i32 : i32 to vector<2x8xi32>
    %144 = arith.addi %127, %143 : vector<2x8xi32>
    %145 = arith.cmpi eq, %125, %144 : vector<2x8xi32>
    %cst_52 = arith.constant 0.000000e+00 : f32
    %146 = vector.shape_cast %142 : vector<2x1xf32> to vector<2x1xf32>
    %147 = vector.broadcast %146 : vector<2x1xf32> to vector<2x8xf32>
    %148 = vector.broadcast %cst_52 : f32 to vector<2x8xf32>
    %149 = arith.select %145, %147, %148 : vector<2x8xi1>, vector<2x8xf32>
    %150 = arith.addf %139, %149 : vector<2x8xf32>
    %151 = vector.extract_strided_slice %123 {offsets = [0, 64], sizes = [2, 32], strides = [1, 1]} : vector<2x128xf32> to vector<2x32xf32>
    %cst_53 = arith.constant dense<0.000000e+00> : vector<2xf32>
    %152 = vector.multi_reduction <add>, %151, %cst_53 [1] : vector<2x32xf32> to vector<2xf32>
    %153 = vector.shape_cast %152 : vector<2xf32> to vector<2x1xf32>
    %c2_i32 = arith.constant 2 : i32
    %154 = vector.broadcast %c2_i32 : i32 to vector<2x8xi32>
    %155 = arith.addi %127, %154 : vector<2x8xi32>
    %156 = arith.cmpi eq, %125, %155 : vector<2x8xi32>
    %cst_54 = arith.constant 0.000000e+00 : f32
    %157 = vector.shape_cast %153 : vector<2x1xf32> to vector<2x1xf32>
    %158 = vector.broadcast %157 : vector<2x1xf32> to vector<2x8xf32>
    %159 = vector.broadcast %cst_54 : f32 to vector<2x8xf32>
    %160 = arith.select %156, %158, %159 : vector<2x8xi1>, vector<2x8xf32>
    %161 = arith.addf %150, %160 : vector<2x8xf32>
    %162 = vector.extract_strided_slice %123 {offsets = [0, 96], sizes = [2, 32], strides = [1, 1]} : vector<2x128xf32> to vector<2x32xf32>
    %cst_55 = arith.constant dense<0.000000e+00> : vector<2xf32>
    %163 = vector.multi_reduction <add>, %162, %cst_55 [1] : vector<2x32xf32> to vector<2xf32>
    %164 = vector.shape_cast %163 : vector<2xf32> to vector<2x1xf32>
    %c3_i32 = arith.constant 3 : i32
    %165 = vector.broadcast %c3_i32 : i32 to vector<2x8xi32>
    %166 = arith.addi %127, %165 : vector<2x8xi32>
    %167 = arith.cmpi eq, %125, %166 : vector<2x8xi32>
    %cst_56 = arith.constant 0.000000e+00 : f32
    %168 = vector.shape_cast %164 : vector<2x1xf32> to vector<2x1xf32>
    %169 = vector.broadcast %168 : vector<2x1xf32> to vector<2x8xf32>
    %170 = vector.broadcast %cst_56 : f32 to vector<2x8xf32>
    %171 = arith.select %167, %169, %170 : vector<2x8xi1>, vector<2x8xf32>
    %172 = arith.addf %161, %171 : vector<2x8xf32>
    %cst_57 = arith.constant dense<0.000000e+00> : vector<8xf32>
    %173 = vector.multi_reduction <add>, %172, %cst_57 [0] : vector<2x8xf32> to vector<8xf32>
    %174 = vector.shape_cast %173 : vector<8xf32> to vector<1x8xf32>
    %175 = vector.shape_cast %174 : vector<1x8xf32> to vector<1x1x8xf32>
    %c0_58 = arith.constant 0 : index
    %c0_59 = arith.constant 0 : index
    %c0_60 = arith.constant 0 : index
    %176 = vector.load %arg5[%c0_58, %c0_59, %c0_60] : memref<1x1x8xf32, #tpu.memory_space<vmem>>, vector<1x1x8xf32>
    tpu.vector_store %arg5[%c0_58, %c0_59, %c0_60], %175 {strides = array<i32>} : memref<1x1x8xf32, #tpu.memory_space<vmem>>, vector<1x1x8xf32>,
    return
  }
  func.func @transform_0(%arg0: i32) -> (i32, i32) {
    %c0_i32 = arith.constant 0 : i32
    %c0_i32_0 = arith.constant 0 : i32
    return %arg0, %c0_i32 : i32, i32
  }
  func.func @transform_1(%arg0: i32) -> (i32, i32) {
    %c0_i32 = arith.constant 0 : i32
    %c0_i32_0 = arith.constant 0 : i32
    %c0_i32_1 = arith.constant 0 : i32
    return %c0_i32, %c0_i32_0 : i32, i32
  }
  func.func @transform_2(%arg0: i32) -> (i32, i32, i32) {
    %c0_i32 = arith.constant 0 : i32
    %c0_i32_0 = arith.constant 0 : i32
    %c0_i32_1 = arith.constant 0 : i32
    %c0_i32_2 = arith.constant 0 : i32
    return %c0_i32, %c0_i32_0, %c0_i32_1 : i32, i32, i32
  }
  func.func @transform_3(%arg0: i32) -> (i32, i32) {
    %c0_i32 = arith.constant 0 : i32
    %c0_i32_0 = arith.constant 0 : i32
    %c0_i32_1 = arith.constant 0 : i32
    return %c0_i32, %c0_i32_0 : i32, i32
  }
  func.func @transform_4(%arg0: i32) -> (i32, i32, i32) {
    %c0_i32 = arith.constant 0 : i32
    %c0_i32_0 = arith.constant 0 : i32
    %c0_i32_1 = arith.constant 0 : i32
    return %arg0, %c0_i32, %c0_i32_0 : i32, i32, i32
  }
}

</mosaic_0001>

<bundles_post_ra>
// kernel: tile.29
= control target key start
LH: loop header
LB: loop body
LE: loop exit
PB: predicated region body
PF: predicated region fallthrough
CT: control target
= control target key end

     0   :  { %s22_s0 = inlined_call_operand.vmem [shape: f32[32], index: 0, kind: input, shape index: {}]   ;;  %s23_s1 = inlined_call_operand.vmem [shape: f32[4,32], index: 1, kind: output, shape index: {}]  }
   0x1   :  { %v4_v0 = vld [vmem:[%s22_s0] ss:$0 sm:$0xff] }
   0x2   :  { %5 = vst [vmem:[%s23_s1] sm:$0xf] %v4_v0 }

// kernel: tile.43
= control target key start
LH: loop header
LB: loop body
LE: loop exit
PB: predicated region body
PF: predicated region fallthrough
CT: control target
= control target key end

     0   :  { %vm7_vm0 = vcmask 261120   ;;  %s37_s8 = smov 32   ;;  %s38_s9 = smov 64   ;;  %vm13_vm1 = vcmask 1048320   ;;  %vm19_vm2 = vcmask 785920   ;;  %vm25_vm3 = vcmask 523520   ;;  %s55_s0 = inlined_call_operand.vmem [shape: f32[4,32], index: 0, kind: input, shape index: {}]   ;;  %s56_s1 = inlined_call_operand.vmem [shape: f32[1,128], index: 1, kind: output, shape index: {}]  }
   0x1   :  { %v4_v0 = vld [vmem:[%s55_s0] sm:$0xf]  ;;  %s36_s0 = smov 96  }
   0x2   :  { %5 = vst [vmem:[#allocation1] sm:$0xf] %v4_v0 }
   0x9   :  { %v10_v1 = vld [vmem:[#allocation1 + $0x3] sm:$0x1]   ;;  %v22_v2 = vld [vmem:[#allocation1 + $0x1] sm:$0x1]   ;;  %v6_v3 = vld [vmem:[#allocation1] sm:$0x1]  }
   0xa   :  { %11 = vrot.lane.b32.xlu0 %v10_v1, %s36_s0  ;;  %23 = vrot.lane.b32.xlu1 %v22_v2, %s37_s8  ;;  %v16_v4 = vld [vmem:[#allocation1 + $0x2] sm:$0x1]   ;;  %8 = vst.msk [vmem:[#allocation0] sm:$0x1] %vm7_vm0, %v6_v3  }
   0xe   :  { %17 = vrot.lane.b32.xlu0 %v16_v4, %s38_s9 }
  0x7c   :  { %v12_v5 = vpop.permute.xlu0 %11   ;;  %v24_v6 = vpop.permute.xlu1 %23  }
  0x7d   :  { %14 = vst.msk [vmem:[#allocation0] sm:$0x1] %vm13_vm1, %v12_v5  }
  0x80   :  { %v18_v7 = vpop.permute.xlu0 %17  }
  0x81   :  { %20 = vst.msk [vmem:[#allocation0] sm:$0x1] %vm19_vm2, %v18_v7  }
  0x82   :  { %26 = vst.msk [vmem:[#allocation0] sm:$0x1] %vm25_vm3, %v24_v6  }
  0x89   :  { %v30_v8 = vld [vmem:[#allocation0] sm:$0x1] }
  0x8a   :  { %32 = vst [vmem:[%s56_s1] sm:$0x1] %v30_v8 }

// kernel: pflow_forward.1
= control target key start
LH: loop header
LB: loop body
LE: loop exit
PB: predicated region body
PF: predicated region fallthrough
CT: control target
= control target key end

     0   :  { %s1575_s15 = smov 0   ;;  %s1833_s0 = inlined_call_operand.vmem [shape: f32[32,16], index: 0, kind: input, shape index: {}]   ;;  %s1834_s1 = inlined_call_operand.vmem [shape: bf16[16,128], index: 1, kind: input, shape index: {}]   ;;  %s1835_s2 = inlined_call_operand.vmem [shape: bf16[6,128,128], index: 2, kind: input, shape index: {}]   ;;  %s1836_s3 = inlined_call_operand.vmem [shape: f32[8,128], index: 3, kind: input, shape index: {}]   ;;  %s1837_s4 = inlined_call_operand.vmem [shape: f32[2,1,8], index: 4, kind: output, shape index: {}]  }
   0x1 LB: > { %s1581_s16 = sadd.s32 4294967295, %s1543_s15   ;;  %p1158_p0 = scmp.ge.s32.totalorder %s1543_s15, 1  ;;  %s1543_s15 = sphi %s1575_s15, %s14_s15  }
   0x2   : > { %p163_p1 = scmp.lt.s32.totalorder %s1543_s15, 3 }
   0x4   : > { %p164_p2 = pnand %p1158_p0, %p163_p1 }
   0x5   : > { %v1488_v0 = vld [vmem:[%s1834_s1] sm:$0xff] (!%p164_p2)   ;;  %v1545_v1 = vmov (!%p164_p2), 0.0   ;;  %s1159_s19 = sshll.u32 (!%p164_p2), %s1581_s16, 1  ;;  %vm1546_vm0 = vmmov (!%p164_p2), 0   ;;  %v1490_v3 = vld [vmem:[%s1835_s2 + $0x8] sm:$0xff] (!%p164_p2)   ;;  %v1491_v4 = vld [vmem:[%s1835_s2 + $0x10] sm:$0xff] (!%p164_p2)   ;;  %v203_v15 = vlaneseq (!%p164_p2) }
   0x6   : > { %167 = sbr.rel (%p164_p2) target bundleno = 1928 (0x788), region = 36  ;;  %1349 = vmatprep.subr.bf16.mxu0 (!%p164_p2), %v1545_v1  ;;  %1355 = vmatprep.subr.bf16.mxu1 (!%p164_p2), %v1545_v1  ;;  %v1489_v2 = vld [vmem:[%s1835_s2] sm:$0xff] (!%p164_p2)   ;;  %p188_p3 = scmp.lt.s32.totalorder (!%p164_p2), %s1159_s19, 3  ;;  %vm213_vm1 = vcmask (!%p164_p2), 130048   ;;  %v1492_v8 = vld [vmem:[%s1835_s2 + $0x18] sm:$0xff] (!%p164_p2)   ;;  %v1494_v10 = vld [vmem:[%s1835_s2 + $0x28] sm:$0xff] (!%p164_p2)  }
   0x7   : > { %1350 = vmatpush3.bf16.msra.mxu0 (!%p164_p2), %v1488_v0  ;;  %1351 = vmatprep.mubr.msk.bf16.mxu0 (!%p164_p2), %vm1546_vm0, %v1545_v1  ;;  %v1493_v9 = vld [vmem:[%s1835_s2 + $0x20] sm:$0xff] (!%p164_p2)   ;;  %v1495_v11 = vld [vmem:[%s1835_s2 + $0x30] sm:$0xff] (!%p164_p2)   ;;  %v1496_v12 = vld [vmem:[%s1835_s2 + $0x38] sm:$0xff] (!%p164_p2)   ;;  %v1642_v16 = vshrl.u32 (!%p164_p2), %v203_v15, 7  ;;  %vm954_vm14 = vcmask (!%p164_p2), 1041409   ;;  %s1547_s26 = smov (!%p164_p2), 32  }
   0x8   : > { %1356 = vmatpush3.bf16.msra.mxu1 (!%p164_p2), %v1489_v2  ;;  %1371 = vmatprep.mubr.msk.bf16.mxu1 (!%p164_p2), %vm1546_vm0, %v1545_v1  ;;  %v1497_v13 = vld [vmem:[%s1835_s2 + $0x40] sm:$0xff] (!%p164_p2)   ;;  %v1498_v14 = vld [vmem:[%s1835_s2 + $0x48] sm:$0xff] (!%p164_p2)   ;;  %v1499_v31 = vld [vmem:[%s1835_s2 + $0x50] sm:$0xff] (!%p164_p2)   ;;  %s1549_s28 = smov (!%p164_p2), 64   ;;  %p193_p4 = scmp.lt.s32.totalorder (!%p164_p2), %s1581_s16, 1 }
   0x9   : > { %1357 = vmatprep.subr.bf16.mxu1 (!%p164_p2), %v1545_v1  ;;  %1375 = vmatprep.subr.bf16.mxu0 (!%p164_p2), %v1545_v1  ;;  %v205_v17 = vsub.s32 (!%p164_p2), 0, %v1642_v16  ;;  %v1648_v18 = vld [vmem:[%s1836_s3] sm:$0xff] (!%p164_p2)  ;;  %v1500_v32 = vld [vmem:[%s1835_s2 + $0x58] sm:$0xff] (!%p164_p2)   ;;  %v1502_v34 = vld [vmem:[%s1835_s2 + $0x68] sm:$0xff] (!%p164_p2)   ;;  %v283_v39 = vsub.s32 (!%p164_p2), 1, %v1642_v16 }
   0xa   : > { %v1501_v33 = vld [vmem:[%s1835_s2 + $0x60] sm:$0xff] (!%p164_p2)   ;;  %v1503_v35 = vld [vmem:[%s1835_s2 + $0x70] sm:$0xff] (!%p164_p2)   ;;  %v1504_v36 = vld [vmem:[%s1835_s2 + $0x78] sm:$0xff] (!%p164_p2)  }
   0xb   : > { %v206_v19 = vrot.slane (!%p164_p2), %v1648_v18, %v205_v17  ;;  %v1505_v37 = vld [vmem:[%s1835_s2 + $0x80] sm:$0xff] (!%p164_p2)   ;;  %v1506_v38 = vld [vmem:[%s1835_s2 + $0x88] sm:$0xff] (!%p164_p2)   ;;  %v284_v40 = vrot.slane (!%p164_p2), %v1648_v18, %v283_v39 }
   0xc   : > { %1358 = vmatpush3.bf16.msra.mxu1 (!%p164_p2), %v1490_v3 }
   0xd   : > { %s1839_s19 = smov (!%p188_p3, %s1159_s19), 3  ;;  %1359 = vmatprep.subr.bf16.mxu1 %v1545_v1  ;;  %s1841_s16 = smov (!%p193_p4, %s1581_s16), 1 }
   0xe   : > { %s1160_s24 = sshll.u32 %s1839_s19, 3  ;;  %s195_s5 = scalar_lea.vmem %s1837_s4, %s1841_s16 }
   0xf   : > { %s191_s27 = scalar_lea.vmem %s1833_s0, %s1160_s24 }
  0x10   : > { %v198_v5 = vld [vmem:[%s191_s27] sm:$0xff]  ;;  %v199_v6 = vld [vmem:[%s191_s27 + $0x8] sm:$0xff]  ;;  %1360 = vmatpush3.bf16.msra.mxu1 %v1491_v4  ;;  %s1548_s27 = smov 96  }
  0x11   : > { %v200_v7 = vpack.c.bf16 %v199_v6, %v198_v5  ;;  %1361 = vmatprep.subr.bf16.mxu1 %v1545_v1  ;;  %v1507_v5 = vld [vmem:[%s1835_s2 + $0x90] sm:$0xff]   ;;  %v1508_v6 = vld [vmem:[%s1835_s2 + $0x98] sm:$0xff]  }
  0x13   : > { %1352 = vmatmul.mubr.msk.bf16.vlgmr.msra.gmra.mrb[0].mxu0 %vm213_vm1, %v200_v7  ;;  %v1509_v7 = vld [vmem:[%s1835_s2 + $0xa0] sm:$0xff]  }
  0x14   : > { %1391 = vmatprep.mubr.msk.bf16.mxu0 %vm1546_vm0, %v1545_v1  ;;  %1362 = vmatpush3.bf16.msra.mxu1 %v1492_v8  ;;  %v1510_v8 = vld [vmem:[%s1835_s2 + $0xa8] sm:$0xff]  }
  0x15   : > { %1363 = vmatprep.subr.bf16.mxu1 %v1545_v1  ;;  %1376 = vmatpush3.bf16.msra.mxu0 %v1497_v13  ;;  %v417_v13 = vsub.s32 2, %v1642_v16 }
  0x16   : > { %1377 = vmatprep.subr.bf16.mxu0 %v1545_v1 }
  0x18   : > { %1364 = vmatpush3.bf16.msra.mxu1 %v1493_v9  ;;  %v1511_v9 = vld [vmem:[%s1835_s2 + $0xb0] sm:$0xff]  }
  0x19   : > { %1365 = vmatprep.subr.bf16.mxu1 %v1545_v1  ;;  %1378 = vmatpush3.bf16.msra.mxu0 %v1498_v14  ;;  %v418_v14 = vrot.slane %v1648_v18, %v417_v13 }
  0x1a   : > { %1379 = vmatprep.subr.bf16.mxu0 %v1545_v1 }
  0x1c   : > { %1366 = vmatpush3.bf16.msra.mxu1 %v1494_v10  ;;  %v1512_v10 = vld [vmem:[%s1835_s2 + $0xb8] sm:$0xff]  }
  0x1d   : > { %1367 = vmatprep.subr.bf16.mxu1 %v1545_v1  ;;  %1380 = vmatpush3.bf16.msra.mxu0 %v1499_v31 }
  0x1e   : > { %1381 = vmatprep.subr.bf16.mxu0 %v1545_v1 }
  0x20   : > { %1368 = vmatpush3.bf16.msra.mxu1 %v1495_v11  ;;  %v1513_v11 = vld [vmem:[%s1835_s2 + $0xc0] sm:$0xff]  }
  0x21   : > { %1369 = vmatprep.subr.bf16.mxu1 %v1545_v1  ;;  %1382 = vmatpush3.bf16.msra.mxu0 %v1500_v32 }
  0x22   : > { %1383 = vmatprep.subr.bf16.mxu0 %v1545_v1 }
  0x24   : > { %1370 = vmatpush3.bf16.msra.mxu1 %v1496_v12  ;;  %v1514_v12 = vld [vmem:[%s1835_s2 + $0xc8] sm:$0xff]  }
  0x25   : > { %1395 = vmatprep.subr.bf16.mxu1 %v1545_v1  ;;  %1384 = vmatpush3.bf16.msra.mxu0 %v1501_v33 }
  0x26   : > { %1385 = vmatprep.subr.bf16.mxu0 %v1545_v1 }
  0x29   : > { %1386 = vmatpush3.bf16.msra.mxu0 %v1502_v34 }
  0x2a   : > { %1387 = vmatprep.subr.bf16.mxu0 %v1545_v1 }
  0x2d   : > { %1388 = vmatpush3.bf16.msra.mxu0 %v1503_v35 }
  0x2e   : > { %1389 = vmatprep.subr.bf16.mxu0 %v1545_v1 }
  0x31   : > { %1390 = vmatpush3.bf16.msra.mxu0 %v1504_v36 }
  0x32   : > { %1415 = vmatprep.subr.bf16.mxu0 %v1545_v1 }
  0xe6   : > { %v251_v20 = vpop.f32.mrb[0].mxu0 }
  0xe7   : > { %v252_v21 = vadd.f32 %v251_v20, %v206_v19  ;;  %v1353_v22 = vpop.f32.mrb[1].mxu0 }
  0xe8   : > { %v254_v23 = vpop.f32.mrb[2].mxu0 }
  0xe9   : > { %v260_v24 = vmul.f32 0.01, %v252_v21  ;;  %v255_v25 = vadd.f32 %v254_v23, %v206_v19  ;;  %v1354_v26 = vpop.f32.mrb[3].mxu0  ;;  %vm258_vm2 = vcmp.ge.f32.partialorder %v252_v21, 0.0 }
  0xeb   : > { %vm259_vm3 = vcmp.ge.f32.partialorder %v255_v25, 0.0  ;;  %v261_v27 = vmul.f32 0.01, %v255_v25  ;;  %v262_v28 = vsel %vm258_vm2, %v252_v21, %v260_v24 }
  0xed   : > { %v263_v29 = vsel %vm259_vm3, %v255_v25, %v261_v27 }
  0xee   : > { %v264_v30 = vpack.c.bf16 %v263_v29, %v262_v28 }
  0xf0   : > { %1372 = vmatmul.mubr.bf16.vlgmr.msra.gmra.mrb[0].mxu1 %v264_v30 }
  0xf1   : > { %1411 = vmatprep.mubr.msk.bf16.mxu1 %vm1546_vm0, %v1545_v1  ;;  %1396 = vmatpush3.bf16.msra.mxu1 %v1505_v37 }
  0xf2   : > { %1397 = vmatprep.subr.bf16.mxu1 %v1545_v1 }
  0xf5   : > { %1398 = vmatpush3.bf16.msra.mxu1 %v1506_v38 }
  0xf6   : > { %1399 = vmatprep.subr.bf16.mxu1 %v1545_v1 }
  0xf9   : > { %1400 = vmatpush3.bf16.msra.mxu1 %v1507_v5 }
  0xfa   : > { %1401 = vmatprep.subr.bf16.mxu1 %v1545_v1 }
  0xfd   : > { %1402 = vmatpush3.bf16.msra.mxu1 %v1508_v6 }
  0xfe   : > { %1403 = vmatprep.subr.bf16.mxu1 %v1545_v1 }
 0x101   : > { %1404 = vmatpush3.bf16.msra.mxu1 %v1509_v7 }
 0x102   : > { %1405 = vmatprep.subr.bf16.mxu1 %v1545_v1 }
 0x105   : > { %1406 = vmatpush3.bf16.msra.mxu1 %v1510_v8 }
 0x106   : > { %1407 = vmatprep.subr.bf16.mxu1 %v1545_v1 }
 0x109   : > { %1408 = vmatpush3.bf16.msra.mxu1 %v1511_v9 }
 0x10a   : > { %1409 = vmatprep.subr.bf16.mxu1 %v1545_v1 }
 0x10d   : > { %1410 = vmatpush3.bf16.msra.mxu1 %v1512_v10 }
 0x10e   : > { %1435 = vmatprep.subr.bf16.mxu1 %v1545_v1 }
 0x1c3   : > { %v367_v41 = vpop.f32.mrb[0].mxu1 }
 0x1c4   : > { %v368_v42 = vadd.f32 %v367_v41, %v284_v40  ;;  %v1373_v43 = vpop.f32.mrb[1].mxu1 }
 0x1c5   : > { %v370_v44 = vpop.f32.mrb[2].mxu1 }
 0x1c6   : > { %vm374_vm4 = vcmp.ge.f32.partialorder %v368_v42, 0.0  ;;  %v376_v45 = vmul.f32 0.01, %v368_v42  ;;  %v371_v46 = vadd.f32 %v370_v44, %v284_v40  ;;  %v1374_v47 = vpop.f32.mrb[3].mxu1 }
 0x1c7   : > { %v1517_v47 = vld [vmem:[%s1835_s2 + $0xe0] sm:$0xff]  }
 0x1c8   : > { %v378_v48 = vsel %vm374_vm4, %v368_v42, %v376_v45  ;;  %vm375_vm5 = vcmp.ge.f32.partialorder %v371_v46, 0.0  ;;  %v377_v49 = vmul.f32 0.01, %v371_v46  ;;  %v1515_v45 = vld [vmem:[%s1835_s2 + $0xd0] sm:$0xff]  }
 0x1c9   : > { %v380_v50 = vrot.slane %v378_v48, 4 }
 0x1ca   : > { %v379_v51 = vsel %vm375_vm5, %v371_v46, %v377_v49  ;;  %v1516_v46 = vld [vmem:[%s1835_s2 + $0xd8] sm:$0xff]   ;;  %v1519_v49 = vld [vmem:[%s1835_s2 + $0xf0] sm:$0xff]   ;;  %vm1097_vm5 = vcmask 58368  }
 0x1cb   : > { %v381_v52 = vadd.f32 %v380_v50, %v378_v48  ;;  %v386_v53 = vrot.slane %v379_v51, 4  ;;  %v1520_v50 = vld [vmem:[%s1835_s2 + $0xf8] sm:$0xff]  }
 0x1cd   : > { %v382_v54 = vrot.slane %v381_v52, 2  ;;  %v387_v55 = vadd.f32 %v386_v53, %v379_v51  ;;  %v550_v53 = vsub.s32 3, %v1642_v16 }
 0x1cf   : > { %v383_v56 = vadd.f32 %v382_v54, %v381_v52  ;;  %v388_v57 = vrot.slane %v387_v55, 2  ;;  %v1522_v52 = vld [vmem:[%s1835_s2 + $0x108] sm:$0xff]   ;;  %v551_v54 = vrot.slane %v1648_v18, %v550_v53 }
 0x1d1   : > { %v384_v58 = vrot.slane %v383_v56, 1  ;;  %v389_v59 = vadd.f32 %v388_v57, %v387_v55 }
 0x1d3   : > { %v385_v60 = vadd.f32 %v384_v58, %v383_v56  ;;  %v390_v61 = vrot.slane %v389_v59, 1 }
 0x1d5   : > { %v393_v62 = vmul.f32 0.125, %v385_v60  ;;  %v391_v63 = vadd.f32 %v390_v61, %v389_v59 }
 0x1d7   : > { %v394_v0 = vmul.f32 0.125, %v391_v63  ;;  %v395_v2 = vadd.f32 %v393_v62, %v378_v48  ;;  %v1518_v48 = vld [vmem:[%s1835_s2 + $0xe8] sm:$0xff]  }
 0x1d9   : > { %v396_v3 = vadd.f32 %v394_v0, %v379_v51  ;;  %v1521_v51 = vld [vmem:[%s1835_s2 + $0x100] sm:$0xff]  }
 0x1db   : > { %v397_v4 = vpack.c.bf16 %v396_v3, %v395_v2 }
 0x1dd   : > { %1392 = vmatmul.mubr.bf16.vlgmr.msra.gmra.mrb[4].mxu0 %v397_v4 }
 0x1de   : > { %1431 = vmatprep.mubr.msk.bf16.mxu0 %vm1546_vm0, %v1545_v1  ;;  %1416 = vmatpush3.bf16.msra.mxu0 %v1513_v11 }
 0x1df   : > { %1417 = vmatprep.subr.bf16.mxu0 %v1545_v1 }
 0x1e2   : > { %1418 = vmatpush3.bf16.msra.mxu0 %v1514_v12 }
 0x1e3   : > { %1419 = vmatprep.subr.bf16.mxu0 %v1545_v1 }
 0x1e6   : > { %1420 = vmatpush3.bf16.msra.mxu0 %v1515_v45 }
 0x1e7   : > { %1421 = vmatprep.subr.bf16.mxu0 %v1545_v1 }
 0x1ea   : > { %1422 = vmatpush3.bf16.msra.mxu0 %v1516_v46 }
 0x1eb   : > { %1423 = vmatprep.subr.bf16.mxu0 %v1545_v1 }
 0x1ee   : > { %1424 = vmatpush3.bf16.msra.mxu0 %v1517_v47 }
 0x1ef   : > { %1425 = vmatprep.subr.bf16.mxu0 %v1545_v1 }
 0x1f2   : > { %1426 = vmatpush3.bf16.msra.mxu0 %v1518_v48 }
 0x1f3   : > { %1427 = vmatprep.subr.bf16.mxu0 %v1545_v1 }
 0x1f6   : > { %1428 = vmatpush3.bf16.msra.mxu0 %v1519_v49 }
 0x1f7   : > { %1429 = vmatprep.subr.bf16.mxu0 %v1545_v1 }
 0x1fa   : > { %1430 = vmatpush3.bf16.msra.mxu0 %v1520_v50 }
 0x1fb   : > { %1455 = vmatprep.subr.bf16.mxu0 %v1545_v1 }
 0x2b0   : > { %v501_v17 = vpop.f32.mrb[4].mxu0 }
 0x2b1   : > { %v502_v19 = vadd.f32 %v501_v17, %v418_v14  ;;  %v1393_v20 = vpop.f32.mrb[5].mxu0 }
 0x2b2   : > { %v504_v21 = vpop.f32.mrb[6].mxu0 }
 0x2b3   : > { %vm508_vm6 = vcmp.ge.f32.partialorder %v502_v19, 0.0  ;;  %v510_v22 = vmul.f32 0.01, %v502_v19  ;;  %v505_v23 = vadd.f32 %v504_v21, %v418_v14  ;;  %v1394_v24 = vpop.f32.mrb[7].mxu0 }
 0x2b4   : > { %v1525_v24 = vld [vmem:[%s1835_s2 + $0x120] sm:$0xff]  }
 0x2b5   : > { %v512_v25 = vsel %vm508_vm6, %v502_v19, %v510_v22  ;;  %vm509_vm7 = vcmp.ge.f32.partialorder %v505_v23, 0.0  ;;  %v511_v26 = vmul.f32 0.01, %v505_v23  ;;  %v1523_v22 = vld [vmem:[%s1835_s2 + $0x110] sm:$0xff]   ;;  %vm1105_vm6 = vcmask 57344  }
 0x2b6   : > { %v514_v27 = vrot.slane %v512_v25, 4 }
 0x2b7   : > { %v513_v28 = vsel %vm509_vm7, %v505_v23, %v511_v26  ;;  %v1524_v23 = vld [vmem:[%s1835_s2 + $0x118] sm:$0xff]   ;;  %v1527_v26 = vld [vmem:[%s1835_s2 + $0x130] sm:$0xff]  }
 0x2b8   : > { %v515_v29 = vadd.f32 %v514_v27, %v512_v25  ;;  %v520_v30 = vrot.slane %v513_v28, 4  ;;  %v1528_v27 = vld [vmem:[%s1835_s2 + $0x138] sm:$0xff]  }
 0x2ba   : > { %v516_v31 = vrot.slane %v515_v29, 2  ;;  %v521_v32 = vadd.f32 %v520_v30, %v513_v28 }
 0x2bc   : > { %v517_v33 = vadd.f32 %v516_v31, %v515_v29  ;;  %v522_v34 = vrot.slane %v521_v32, 2  ;;  %v683_v29 = vsub.s32 4, %v1642_v16 }
 0x2be   : > { %v518_v35 = vrot.slane %v517_v33, 1  ;;  %v523_v36 = vadd.f32 %v522_v34, %v521_v32  ;;  %v684_v30 = vrot.slane %v1648_v18, %v683_v29 }
 0x2c0   : > { %v519_v37 = vadd.f32 %v518_v35, %v517_v33  ;;  %v524_v38 = vrot.slane %v523_v36, 1 }
 0x2c2   : > { %v526_v39 = vmul.f32 0.125, %v519_v37  ;;  %v525_v40 = vadd.f32 %v524_v38, %v523_v36 }
 0x2c4   : > { %v527_v41 = vmul.f32 0.125, %v525_v40  ;;  %v528_v42 = vadd.f32 %v526_v39, %v512_v25  ;;  %v1526_v25 = vld [vmem:[%s1835_s2 + $0x128] sm:$0xff]  }
 0x2c6   : > { %v529_v43 = vadd.f32 %v527_v41, %v513_v28  ;;  %v1529_v28 = vld [vmem:[%s1835_s2 + $0x140] sm:$0xff]  }
 0x2c8   : > { %v530_v44 = vpack.c.bf16 %v529_v43, %v528_v42 }
 0x2ca   : > { %1412 = vmatmul.mubr.bf16.vlgmr.msra.gmra.mrb[4].mxu1 %v530_v44 }
 0x2cb   : > { %1451 = vmatprep.mubr.msk.bf16.mxu1 %vm1546_vm0, %v1545_v1  ;;  %1436 = vmatpush3.bf16.msra.mxu1 %v1521_v51 }
 0x2cc   : > { %1437 = vmatprep.subr.bf16.mxu1 %v1545_v1 }
 0x2cf   : > { %1438 = vmatpush3.bf16.msra.mxu1 %v1522_v52 }
 0x2d0   : > { %1439 = vmatprep.subr.bf16.mxu1 %v1545_v1 }
 0x2d3   : > { %1440 = vmatpush3.bf16.msra.mxu1 %v1523_v22 }
 0x2d4   : > { %1441 = vmatprep.subr.bf16.mxu1 %v1545_v1 }
 0x2d7   : > { %1442 = vmatpush3.bf16.msra.mxu1 %v1524_v23 }
 0x2d8   : > { %1443 = vmatprep.subr.bf16.mxu1 %v1545_v1 }
 0x2db   : > { %1444 = vmatpush3.bf16.msra.mxu1 %v1525_v24 }
 0x2dc   : > { %1445 = vmatprep.subr.bf16.mxu1 %v1545_v1 }
 0x2df   : > { %1446 = vmatpush3.bf16.msra.mxu1 %v1526_v25 }
 0x2e0   : > { %1447 = vmatprep.subr.bf16.mxu1 %v1545_v1 }
 0x2e3   : > { %1448 = vmatpush3.bf16.msra.mxu1 %v1527_v26 }
 0x2e4   : > { %1449 = vmatprep.subr.bf16.mxu1 %v1545_v1 }
 0x2e7   : > { %1450 = vmatpush3.bf16.msra.mxu1 %v1528_v27 }
 0x39d   : > { %v634_v55 = vpop.f32.mrb[4].mxu1 }
 0x39e   : > { %v635_v56 = vadd.f32 %v634_v55, %v551_v54  ;;  %v1413_v57 = vpop.f32.mrb[5].mxu1 }
 0x39f   : > { %v637_v58 = vpop.f32.mrb[6].mxu1 }
 0x3a0   : > { %vm641_vm8 = vcmp.ge.f32.partialorder %v635_v56, 0.0  ;;  %v643_v59 = vmul.f32 0.01, %v635_v56  ;;  %v638_v60 = vadd.f32 %v637_v58, %v551_v54  ;;  %v1414_v61 = vpop.f32.mrb[7].mxu1  ;;  %v1530_v58 = vld [vmem:[%s1835_s2 + $0x148] sm:$0xff]  }
 0x3a1   : > { %v1533_v61 = vld [vmem:[%s1835_s2 + $0x160] sm:$0xff]  }
 0x3a2   : > { %v645_v62 = vsel %vm641_vm8, %v635_v56, %v643_v59  ;;  %vm642_vm9 = vcmp.ge.f32.partialorder %v638_v60, 0.0  ;;  %v644_v63 = vmul.f32 0.01, %v638_v60  ;;  %v1531_v59 = vld [vmem:[%s1835_s2 + $0x150] sm:$0xff]  }
 0x3a3   : > { %v647_v0 = vrot.slane %v645_v62, 4 }
 0x3a4   : > { %v646_v2 = vsel %vm642_vm9, %v638_v60, %v644_v63  ;;  %v1532_v60 = vld [vmem:[%s1835_s2 + $0x158] sm:$0xff]   ;;  %v1535_v63 = vld [vmem:[%s1835_s2 + $0x170] sm:$0xff]  }
 0x3a5   : > { %v648_v3 = vadd.f32 %v647_v0, %v645_v62  ;;  %v653_v4 = vrot.slane %v646_v2, 4  ;;  %v1536_v0 = vld [vmem:[%s1835_s2 + $0x178] sm:$0xff]  }
 0x3a7   : > { %v649_v5 = vrot.slane %v648_v3, 2  ;;  %v654_v6 = vadd.f32 %v653_v4, %v646_v2 }
 0x3a9   : > { %v650_v7 = vadd.f32 %v649_v5, %v648_v3  ;;  %v655_v8 = vrot.slane %v654_v6, 2 }
 0x3ab   : > { %v651_v9 = vrot.slane %v650_v7, 1  ;;  %v656_v10 = vadd.f32 %v655_v8, %v654_v6 }
 0x3ad   : > { %v652_v11 = vadd.f32 %v651_v9, %v650_v7  ;;  %v657_v12 = vrot.slane %v656_v10, 1 }
 0x3af   : > { %v659_v13 = vmul.f32 0.125, %v652_v11  ;;  %v658_v14 = vadd.f32 %v657_v12, %v656_v10 }
 0x3b1   : > { %v660_v17 = vmul.f32 0.125, %v658_v14  ;;  %v661_v19 = vadd.f32 %v659_v13, %v645_v62  ;;  %v1534_v62 = vld [vmem:[%s1835_s2 + $0x168] sm:$0xff]  }
 0x3b3   : > { %v662_v20 = vadd.f32 %v660_v17, %v646_v2  ;;  %v816_v2 = vsub.s32 5, %v1642_v16 }
 0x3b5   : > { %v663_v21 = vpack.c.bf16 %v662_v20, %v661_v19  ;;  %v817_v3 = vrot.slane %v1648_v18, %v816_v2 }
 0x3b7   : > { %1432 = vmatmul.mubr.bf16.vlgmr.msra.gmra.mrb[8].mxu0 %v663_v21 }
 0x3b8   : > { %1471 = vmatprep.mubr.msk.bf16.mxu0 %vm1546_vm0, %v1545_v1  ;;  %1456 = vmatpush3.bf16.msra.mxu0 %v1529_v28  ;;  %vm1059_vm0 = vcmask 254976  }
 0x3b9   : > { %1457 = vmatprep.subr.bf16.mxu0 %v1545_v1 }
 0x3bc   : > { %1458 = vmatpush3.bf16.msra.mxu0 %v1530_v58 }
 0x3bd   : > { %1459 = vmatprep.subr.bf16.mxu0 %v1545_v1 }
 0x3c0   : > { %1460 = vmatpush3.bf16.msra.mxu0 %v1531_v59 }
 0x3c1   : > { %1461 = vmatprep.subr.bf16.mxu0 %v1545_v1 }
 0x3c4   : > { %1462 = vmatpush3.bf16.msra.mxu0 %v1532_v60 }
 0x3c5   : > { %1463 = vmatprep.subr.bf16.mxu0 %v1545_v1 }
 0x3c8   : > { %1464 = vmatpush3.bf16.msra.mxu0 %v1533_v61 }
 0x3c9   : > { %1465 = vmatprep.subr.bf16.mxu0 %v1545_v1 }
 0x3cc   : > { %1466 = vmatpush3.bf16.msra.mxu0 %v1534_v62 }
 0x3cd   : > { %1467 = vmatprep.subr.bf16.mxu0 %v1545_v1 }
 0x3d0   : > { %1468 = vmatpush3.bf16.msra.mxu0 %v1535_v63 }
 0x3d1   : > { %1469 = vmatprep.subr.bf16.mxu0 %v1545_v1 }
 0x3d4   : > { %1470 = vmatpush3.bf16.msra.mxu0 %v1536_v0 }
 0x48a   : > { %v767_v31 = vpop.f32.mrb[8].mxu0 }
 0x48b   : > { %v768_v32 = vadd.f32 %v767_v31, %v684_v30  ;;  %v1433_v33 = vpop.f32.mrb[9].mxu0 }
 0x48c   : > { %v770_v34 = vpop.f32.mrb[10].mxu0 }
 0x48d   : > { %vm774_vm10 = vcmp.ge.f32.partialorder %v768_v32, 0.0  ;;  %v776_v35 = vmul.f32 0.01, %v768_v32  ;;  %v771_v36 = vadd.f32 %v770_v34, %v684_v30  ;;  %v1434_v37 = vpop.f32.mrb[11].mxu0 }
 0x48f   : > { %v778_v38 = vsel %vm774_vm10, %v768_v32, %v776_v35  ;;  %vm775_vm11 = vcmp.ge.f32.partialorder %v771_v36, 0.0  ;;  %v777_v39 = vmul.f32 0.01, %v771_v36 }
 0x490   : > { %v780_v40 = vrot.slane %v778_v38, 4 }
 0x491   : > { %v779_v41 = vsel %vm775_vm11, %v771_v36, %v777_v39  ;;  %v948_v36 = vsub.s32 6, %v1642_v16 }
 0x492   : > { %v781_v42 = vadd.f32 %v780_v40, %v778_v38  ;;  %v786_v43 = vrot.slane %v779_v41, 4 }
 0x493   : > { %v949_v37 = vrot.slane %v1648_v18, %v948_v36 }
 0x494   : > { %v782_v44 = vrot.slane %v781_v42, 2  ;;  %v787_v45 = vadd.f32 %v786_v43, %v779_v41 }
 0x496   : > { %v783_v46 = vadd.f32 %v782_v44, %v781_v42  ;;  %v788_v47 = vrot.slane %v787_v45, 2 }
 0x498   : > { %v784_v48 = vrot.slane %v783_v46, 1  ;;  %v789_v49 = vadd.f32 %v788_v47, %v787_v45 }
 0x49a   : > { %v785_v50 = vadd.f32 %v784_v48, %v783_v46  ;;  %v790_v51 = vrot.slane %v789_v49, 1 }
 0x49c   : > { %v792_v52 = vmul.f32 0.125, %v785_v50  ;;  %v791_v53 = vadd.f32 %v790_v51, %v789_v49 }
 0x49e   : > { %v793_v54 = vmul.f32 0.125, %v791_v53  ;;  %v794_v55 = vadd.f32 %v792_v52, %v778_v38  ;;  %v1051_v38 = vsub.s32 7, %v1642_v16 }
 0x4a0   : > { %v795_v56 = vadd.f32 %v793_v54, %v779_v41  ;;  %v1052_v42 = vrot.slane %v1648_v18, %v1051_v38  ;;  %v1058_v54 = vmul.u32 4, %v1642_v16 }
 0x4a2   : > { %v796_v57 = vpack.c.bf16 %v795_v56, %v794_v55  ;;  %v1073_v55 = vadd.s32 1, %v1058_v54  ;;  %v1057_v56 = vand.u32 127, %v203_v15  ;;  %v1093_v60 = vadd.s32 3, %v1058_v54 }
 0x4a4   : > { %1452 = vmatmul.mubr.bf16.vlgmr.msra.gmra.mrb[8].mxu1 %v796_v57  ;;  %vm1074_vm1 = vcmp.eq.s32.totalorder %v1057_v56, %v1073_v55  ;;  %v1083_v57 = vadd.s32 2, %v1058_v54  ;;  %vm1063_vm2 = vcmp.eq.s32.totalorder %v1057_v56, %v1058_v54  ;;  %vm1094_vm4 = vcmp.eq.s32.totalorder %v1057_v56, %v1093_v60 }
 0x4a6   : > { %vm1084_vm3 = vcmp.eq.s32.totalorder %v1057_v56, %v1083_v57 }
 0x577   : > { %v900_v4 = vpop.f32.mrb[8].mxu1 }
 0x578   : > { %v901_v5 = vadd.f32 %v900_v4, %v817_v3  ;;  %v1453_v6 = vpop.f32.mrb[9].mxu1 }
 0x579   : > { %v903_v7 = vpop.f32.mrb[10].mxu1 }
 0x57a   : > { %vm907_vm12 = vcmp.ge.f32.partialorder %v901_v5, 0.0  ;;  %v909_v8 = vmul.f32 0.01, %v901_v5  ;;  %v904_v9 = vadd.f32 %v903_v7, %v817_v3  ;;  %v1454_v10 = vpop.f32.mrb[11].mxu1 }
 0x57c   : > { %v911_v11 = vsel %vm907_vm12, %v901_v5, %v909_v8  ;;  %vm908_vm13 = vcmp.ge.f32.partialorder %v904_v9, 0.0  ;;  %v910_v1 = vmul.f32 0.01, %v904_v9 }
 0x57d   : > { %v913_v12 = vrot.slane %v911_v11, 4 }
 0x57e   : > { %v912_v13 = vsel %vm908_vm13, %v904_v9, %v910_v1 }
 0x57f   : > { %v914_v14 = vadd.f32 %v913_v12, %v911_v11  ;;  %v919_v17 = vrot.slane %v912_v13, 4 }
 0x581   : > { %v915_v19 = vrot.slane %v914_v14, 2  ;;  %v920_v20 = vadd.f32 %v919_v17, %v912_v13 }
 0x583   : > { %v916_v21 = vadd.f32 %v915_v19, %v914_v14  ;;  %v921_v22 = vrot.slane %v920_v20, 2 }
 0x585   : > { %v917_v23 = vrot.slane %v916_v21, 1  ;;  %v922_v24 = vadd.f32 %v921_v22, %v920_v20 }
 0x587   : > { %v918_v25 = vadd.f32 %v917_v23, %v916_v21  ;;  %v923_v26 = vrot.slane %v922_v24, 1 }
 0x589   : > { %v925_v27 = vmul.f32 0.125, %v918_v25  ;;  %v924_v28 = vadd.f32 %v923_v26, %v922_v24 }
 0x58b   : > { %v927_v29 = vpack.c.bf16 %v925_v27, %v925_v27  ;;  %v926_v30 = vmul.f32 0.125, %v924_v28 }
 0x58d   : > { %v928_v31 = vpack.c.bf16 %v926_v30, %v926_v30  ;;  %v952_v32 = vunpack.c.l.b16 %v927_v29 }
 0x58f   : > { %v953_v33 = vunpack.c.l.b16 %v928_v31 }
 0x591   : > { %v955_v34 = vsel %vm954_vm14, %v953_v33, %v952_v32 }
 0x592   : > { %v956_v35 = vpack.c.b16 %v955_v34, %v955_v34 }
 0x594   : > { %1472 = vmatmul.mubr.bf16.vlgmr.msra.gmra.mrb[12].mxu0 %v956_v35 }
 0x667   : > { %v1040_v39 = vpop.f32.mrb[12].mxu0 }
 0x668   : > { %v1041_v40 = vadd.f32 %v1040_v39, %v949_v37  ;;  %v1473_v41 = vpop.f32.mrb[13].mxu0 }
 0x669   : > { %v1043_v43 = vpop.f32.mrb[14].mxu0 }
 0x66a   : > { %vm1046_vm15 = vcmp.ge.f32.partialorder %v1041_v40, 0.0  ;;  %v1047_v44 = vmul.f32 0.01, %v1041_v40  ;;  %v1474_v45 = vpop.f32.mrb[15].mxu0 }
 0x66c   : > { %v1048_v46 = vsel %vm1046_vm15, %v1041_v40, %v1047_v44 }
 0x66d   : > { %v1053_v47 = vmul.f32 %v1052_v42, %v1048_v46 }
 0x66f   : > { %1087 = vrot.lane.b32.xlu1 %v1053_v47, %s1547_s26  ;;  %1067 = vrot.lane.b32.xlu0 %v1053_v47, %s1548_s27  ;;  %v1060_v48 = vsel %vm1059_vm0, %v1053_v47, 0.0 }
 0x673   : > { %1077 = vrot.lane.b32.xlu0 %v1053_v47, %s1549_s28 }
 0x693   : > { %1061 = vadd.xlane.f32.xlu1 %v1060_v48 }
 0x6e1   : > { %v1088_v49 = vpop.permute.xlu1 %1087  ;;  %v1068_v50 = vpop.permute.xlu0 %1067 }
 0x6e2   : > { %v1070_v51 = vsel %vm1059_vm0, %v1068_v50, 0.0  ;;  %v1090_v52 = vsel %vm1059_vm0, %v1088_v49, 0.0 }
 0x6e3   : > { %1071 = vadd.xlane.f32.xlu0 %v1070_v51  ;;  %1091 = vadd.xlane.f32.xlu1 %v1090_v52 }
 0x6e5   : > { %v1078_v18 = vpop.permute.xlu0 %1077 }
 0x6e6   : > { %v1080_v53 = vsel %vm1059_vm0, %v1078_v18, 0.0 }
 0x6e7   : > { %1081 = vadd.xlane.f32.xlu0 %v1080_v53 }
 0x720   : > { %v1062_v58 = vpop.xlane.xlu1 %1061 }
 0x721   : > { %v1064_v62 = vsel %vm1063_vm2, %v1062_v58, 0.0 }
 0x770   : > { %v1072_v59 = vpop.xlane.xlu0 %1071  ;;  %v1092_v0 = vpop.xlane.xlu1 %1091 }
 0x771   : > { %v1075_v61 = vsel %vm1074_vm1, %v1072_v59, 0.0  ;;  %v1095_v4 = vsel %vm1094_vm4, %v1092_v0, 0.0 }
 0x772   : > { %v1076_v63 = vadd.f32 %v1075_v61, %v1064_v62 }
 0x774   : > { %v1082_v2 = vpop.xlane.xlu0 %1081 }
 0x775   : > { %v1085_v3 = vsel %vm1084_vm3, %v1082_v2, 0.0 }
 0x776   : > { %v1086_v16 = vadd.f32 %v1085_v3, %v1076_v63 }
 0x778   : > { %v1096_v15 = vadd.f32 %v1095_v4, %v1086_v16 }
 0x77a   : > { %v1098_v5 = vsel %vm1097_vm5, %v1096_v15, 0.0 }
 0x77b   : > { %v1099_v6 = vrot.slane %v1098_v5, 4 }
 0x77d   : > { %v1100_v7 = vadd.f32 %v1099_v6, %v1098_v5 }
 0x77f   : > { %v1101_v8 = vrot.slane %v1100_v7, 2 }
 0x781   : > { %v1102_v9 = vadd.f32 %v1101_v8, %v1100_v7 }
 0x783   : > { %v1103_v10 = vrot.slane %v1102_v9, 1 }
 0x785   : > { %v1104_v11 = vadd.f32 %v1103_v10, %v1102_v9 }
 0x787   : > { %1106 = vst.msk [vmem:[%s195_s5] sm:$0x1] %vm1105_vm6, %v1104_v11 }
 0x788 PF: > { %s14_s15 = sadd.s32 1, %s1543_s15  }
 0x789   : > { %p11_p5 = scmp.ge.s32.totalorder %s14_s15, 4  }
 0x78b   :  { %13 = sbr.rel (!%p11_p5) target bundleno = 1 (0x1), region = 71 }

</bundles_post_ra>
